<compile_context>
chip_gen: v6e
topology: v6e:2x2x1
jax: 0.10.0
libtpu: 0.0.40
codegen_flags: <defaults>
</compile_context>

<pallas_src>
import functools
import math

import jax
import jax.numpy as jnp
from jax.experimental import pallas as pl
from jax.experimental.pallas import tpu as pltpu


# ---------------------------------------------------------------------------
# in-kernel helpers
# ---------------------------------------------------------------------------
def _shift3(h, d):
    """(L, C) -> (L, 3C): [h[l-d] | h[l] | h[l+d]], zero outside [0, L)."""
    L, C = h.shape
    z = jnp.zeros((d, C), h.dtype)
    hp = jnp.concatenate([z, h, z], axis=0)                   # (L + 2d, C)
    return jnp.concatenate(
        [hp[0:L], hp[d:d + L], hp[2 * d:2 * d + L]], axis=1)  # (L, 3C)


def _res_unit(x, w, b, alpha, d):
    """x + Conv1d(kernel=3, dilation=d, padding='same')(PReLU(x)); one fused dot."""
    h = jnp.where(x >= 0, x, alpha * x)                       # per-channel PReLU
    y = jnp.dot(_shift3(h, d), w, preferred_element_type=jnp.float32) + b
    return x + y


def _res_block(x, wr_ref, br_ref, ar_ref):
    """The 3 residual dilated-conv units (dilations 1, 2, 4) of a ConvBlock."""
    x = _res_unit(x, wr_ref[0], br_ref[0], ar_ref[0], 1)
    x = _res_unit(x, wr_ref[1], br_ref[1], ar_ref[1], 2)
    x = _res_unit(x, wr_ref[2], br_ref[2], ar_ref[2], 4)
    return x


def _up_conv(x, w, b):
    """Phase-fused ConvTranspose1d: (L, Cin) -> lane-dense (L, r*Cout).

    out_ph[l, q*Cout:(q+1)*Cout] == ConvTranspose1d(x)[l*r + q]; the caller's
    row-major reshape (L, r*Cout) -> (r*L, Cout) is exactly the phase interleave.
    """
    return jnp.dot(_shift3(x, 1), w, preferred_element_type=jnp.float32) + b


def _fit_length(y, length):
    """Trim / zero-pad the time axis to `length` (static)."""
    L, C = y.shape
    if length == L:
        return y
    if length < L:
        return y[:length]
    return jnp.concatenate([y, jnp.zeros((length - L, C), y.dtype)], axis=0)


# ---------------------------------------------------------------------------
# fused-stage kernels
# ---------------------------------------------------------------------------
def _head_kernel(x_ref, wr, br, ar, wu, bu, up_ref):
    """input_conv_block (residual units) fused with up block 0's transposed conv."""
    y = _res_block(x_ref[...], wr, br, ar)
    up_ref[...] = _up_conv(y, wu[...], bu[...]).astype(up_ref.dtype)


def _mid_kernel(y_ref, wr, br, ar, wu, bu, cond_ref, up_ref, *, length):
    """trim/pad + residual units of up block i + transposed conv of up block i+1."""
    y = _fit_length(y_ref[...], length)
    y = _res_block(y, wr, br, ar)
    cond_ref[...] = y.astype(cond_ref.dtype)
    up_ref[...] = _up_conv(y, wu[...], bu[...]).astype(up_ref.dtype)


def _tail_kernel(y_ref, wr, br, ar, cond_ref, *, length):
    """trim/pad + residual units of the last up block."""
    y = _fit_length(y_ref[...], length)
    cond_ref[...] = _res_block(y, wr, br, ar).astype(cond_ref.dtype)


# ---------------------------------------------------------------------------
# pallas_call wrappers
# ---------------------------------------------------------------------------
def _res_in_specs(res_p):
    return [
        pl.BlockSpec(res_p["w"].shape, lambda b: (0, 0, 0)),
        pl.BlockSpec(res_p["b"].shape, lambda b: (0, 0, 0)),
        pl.BlockSpec(res_p["alpha"].shape, lambda b: (0, 0, 0)),
    ]


def _up_in_specs(up_p):
    return [
        pl.BlockSpec(up_p["w"].shape, lambda b: (0, 0)),
        pl.BlockSpec(up_p["b"].shape, lambda b: (0, 0)),
    ]


_PARAMS = pltpu.CompilerParams(dimension_semantics=("parallel",))


def head_stage(x, res_p, up_p):
    """Input conv block + first transposed conv.  x: (B, L, C) -> (B, L, r*Cout)."""
    B, L, C = x.shape
    RC = up_p["w"].shape[1]
    return pl.pallas_call(
        _head_kernel,
        out_shape=jax.ShapeDtypeStruct((B, L, RC), x.dtype),
        grid=(B,),
        in_specs=[pl.BlockSpec((None, L, C), lambda b: (b, 0, 0))]
        + _res_in_specs(res_p) + _up_in_specs(up_p),
        out_specs=pl.BlockSpec((None, L, RC), lambda b: (b, 0, 0)),
        compiler_params=_PARAMS,
    )(x, res_p["w"], res_p["b"], res_p["alpha"], up_p["w"], up_p["b"])


def mid_stage(y, res_p, up_p, length):
    """Residual units of block i + transposed conv of block i+1.

    y: (B, Ly, C).  Returns (cond_i (B, length, C), up_ph (B, length, r*Cout_next)).
    """
    B, Ly, C = y.shape
    RC = up_p["w"].shape[1]
    return pl.pallas_call(
        functools.partial(_mid_kernel, length=length),
        out_shape=(jax.ShapeDtypeStruct((B, length, C), y.dtype),
                   jax.ShapeDtypeStruct((B, length, RC), y.dtype)),
        grid=(B,),
        in_specs=[pl.BlockSpec((None, Ly, C), lambda b: (b, 0, 0))]
        + _res_in_specs(res_p) + _up_in_specs(up_p),
        out_specs=(pl.BlockSpec((None, length, C), lambda b: (b, 0, 0)),
                   pl.BlockSpec((None, length, RC), lambda b: (b, 0, 0))),
        compiler_params=_PARAMS,
    )(y, res_p["w"], res_p["b"], res_p["alpha"], up_p["w"], up_p["b"])


def tail_stage(y, res_p, length):
    """Residual units of the last block.  y: (B, Ly, C) -> (B, length, C)."""
    B, Ly, C = y.shape
    return pl.pallas_call(
        functools.partial(_tail_kernel, length=length),
        out_shape=jax.ShapeDtypeStruct((B, length, C), y.dtype),
        grid=(B,),
        in_specs=[pl.BlockSpec((None, Ly, C), lambda b: (b, 0, 0))]
        + _res_in_specs(res_p),
        out_specs=pl.BlockSpec((None, length, C), lambda b: (b, 0, 0)),
        compiler_params=_PARAMS,
    )(y, res_p["w"], res_p["b"], res_p["alpha"])


# ---------------------------------------------------------------------------
# parameter init (deterministic, synthetic) + weight pre-packing
# ---------------------------------------------------------------------------
def _conv_w(key, k, cin, cout):
    return jax.random.normal(key, (k, cin, cout), jnp.float32) / math.sqrt(k * cin)


def init_res_params(key, c):
    """3 residual units; each (3, c, c) conv weight packed as (3c, c)."""
    ks = jax.random.split(key, 3)
    w = jnp.stack([_conv_w(ks[i], 3, c, c).reshape(3 * c, c) for i in range(3)])
    return {
        "w": w,                                            # (3, 3c, c)
        "b": jnp.zeros((3, 1, c), jnp.float32),            # (3, 1, c)
        "alpha": jnp.full((3, 1, c), 0.25, jnp.float32),   # PReLU (per-channel capable)
    }


def init_up_params(key, cin, cout, r):
    """ConvTranspose1d(cin->cout, k=2r, stride=r, pad=r//2) packed phase-fused.

    out[l*r + q] = x[l + d0] @ wt[k0] + x[l + d0 - 1] @ wt[k1] + b
    with k0 = (q + r//2) % r, k1 = k0 + r, d0 = (q + r//2) // r.
    Row blocks of the packed weight correspond to [x[l-1] | x[l] | x[l+1]].
    """
    wt = _conv_w(key, 2 * r, cin, cout)                    # (2r, cin, cout) taps
    p = r // 2
    wbig = jnp.zeros((3, cin, r, cout), jnp.float32)
    for q in range(r):
        k0 = (q + p) % r
        k1 = k0 + r
        d0 = (q + p) // r                                  # 0 or 1
        wbig = wbig.at[1 + d0, :, q, :].set(wt[k0])        # x[l + d0]
        wbig = wbig.at[d0, :, q, :].set(wt[k1])            # x[l + d0 - 1]
    return {
        "w": wbig.reshape(3 * cin, r * cout),              # (3*cin, r*cout)
        "b": jnp.zeros((1, r * cout), jnp.float32),        # bias tiled over phases
        "r": r,
    }


# ---------------------------------------------------------------------------
# ConditionerDecoder
# ---------------------------------------------------------------------------
class ConditionerDecoderPallas:
    def __init__(self, up_factors, input_channels, key, with_extra_conv_block=False):
        assert not with_extra_conv_block, "extra_conv_block not modelled"  # TODO(synk)
        for r in up_factors:
            assert r % 2 == 0, "kernel assumes even up factors (padding = r // 2)"
        self.up_factors = tuple(up_factors)
        n = len(up_factors)
        n_channels = [input_channels * 2 ** (n - i - 1) for i in range(n)]
        keys = jax.random.split(key, n + 1)
        self.input_res = init_res_params(keys[0], 2 * n_channels[0])
        self.res, self.up = [], []
        for k, c, r in zip(keys[1:], n_channels, up_factors):
            k_up, k_res = jax.random.split(k)
            self.up.append(init_up_params(k_up, 2 * c, c, r))  # ConvTranspose 2c -> c
            self.res.append(init_res_params(k_res, c))

    def __call__(self, x, lengths):
        # x: (B, L0, input_channels * 2**len(up_factors)); lengths: static ints.
        n = len(self.up_factors)
        B = x.shape[0]
        # head: input_conv_block fused with up block 0's transposed conv
        up_ph = head_stage(x, self.input_res, self.up[0])      # (B, L0, r0*c0)
        conditions = []
        for i in range(n):
            c_i = self.res[i]["w"].shape[-1]
            Ly = up_ph.shape[1] * self.up_factors[i]
            y = up_ph.reshape(B, Ly, c_i)                      # free phase interleave
            if i + 1 < n:
                cond, up_ph = mid_stage(y, self.res[i], self.up[i + 1], lengths[i])
            else:
                cond = tail_stage(y, self.res[i], lengths[i])
            conditions.append(cond)
        return conditions[-1], conditions


# ---------------------------------------------------------------------------
if __name__ == "__main__":
    key = jax.random.PRNGKey(0)
    k_param, k_x = jax.random.split(key)

    up_factors = (2, 2)
    input_channels = 8
    B, L0 = 2, 16
    C0 = input_channels * 2 ** len(up_factors)                 # 32 input channels

    model = ConditionerDecoderPallas(up_factors, input_channels, k_param)

    x = jax.random.normal(k_x, (B, L0, C0), jnp.float32)
    lengths = [L0 * 2, L0 * 4]                                 # target length per stage

    out, conditions = model(x, lengths)
    jax.block_until_ready(out)
    for c in conditions:
        jax.block_until_ready(c)

    assert out.shape == (B, L0 * 4, input_channels)
    assert conditions[0].shape == (B, L0 * 2, input_channels * 2)
    assert conditions[1].shape == (B, L0 * 4, input_channels)
    assert jnp.all(jnp.isfinite(out))
    print("KERNEL_OK")
</pallas_src>

<mosaic_0001>
module attributes {stable_mosaic.version = 11 : i64} {
  func.func @_head_kernel(%arg0: i32, %arg1: memref<1x16x32xf32, #tpu.memory_space<vmem>>, %arg2: memref<3x96x32xf32, #tpu.memory_space<vmem>>, %arg3: memref<3x1x32xf32, #tpu.memory_space<vmem>>, %arg4: memref<3x1x32xf32, #tpu.memory_space<vmem>>, %arg5: memref<96x32xf32, #tpu.memory_space<vmem>>, %arg6: memref<1x32xf32, #tpu.memory_space<vmem>>, %arg7: memref<1x16x32xf32, #tpu.memory_space<vmem>>) attributes {dimension_semantics = [#tpu.dimension_semantics<parallel>], iteration_bounds = array<i64: 2>, scalar_prefetch = 0 : i64, scratch_operands = 0 : i64, tpu.core_type = #tpu.core_type<tc>, window_params = [{transform_indices = @transform_0, window_bounds = array<i64: 1, 16, 32>}, {pipeline_mode = #tpu.pipeline_mode<synchronous>, transform_indices = @transform_1, window_bounds = array<i64: 3, 96, 32>}, {pipeline_mode = #tpu.pipeline_mode<synchronous>, transform_indices = @transform_2, window_bounds = array<i64: 3, 1, 32>}, {pipeline_mode = #tpu.pipeline_mode<synchronous>, transform_indices = @transform_3, window_bounds = array<i64: 3, 1, 32>}, {pipeline_mode = #tpu.pipeline_mode<synchronous>, transform_indices = @transform_4, window_bounds = array<i64: 96, 32>}, {pipeline_mode = #tpu.pipeline_mode<synchronous>, transform_indices = @transform_5, window_bounds = array<i64: 1, 32>}, {transform_indices = @transform_6, window_bounds = array<i64: 1, 16, 32>}]} {
    %c0 = arith.constant 0 : index
    %c0_0 = arith.constant 0 : index
    %c0_1 = arith.constant 0 : index
    %0 = vector.load %arg1[%c0, %c0_0, %c0_1] : memref<1x16x32xf32, #tpu.memory_space<vmem>>, vector<1x16x32xf32>
    %1 = vector.shape_cast %0 : vector<1x16x32xf32> to vector<16x32xf32>
    %c0_2 = arith.constant 0 : index
    %c0_3 = arith.constant 0 : index
    %c0_4 = arith.constant 0 : index
    %2 = vector.load %arg2[%c0_2, %c0_3, %c0_4] : memref<3x96x32xf32, #tpu.memory_space<vmem>>, vector<1x96x32xf32>
    %3 = vector.shape_cast %2 : vector<1x96x32xf32> to vector<96x32xf32>
    %c0_5 = arith.constant 0 : index
    %c0_6 = arith.constant 0 : index
    %c0_7 = arith.constant 0 : index
    %4 = vector.load %arg3[%c0_5, %c0_6, %c0_7] : memref<3x1x32xf32, #tpu.memory_space<vmem>>, vector<1x1x32xf32>
    %5 = vector.shape_cast %4 : vector<1x1x32xf32> to vector<1x32xf32>
    %c0_8 = arith.constant 0 : index
    %c0_9 = arith.constant 0 : index
    %c0_10 = arith.constant 0 : index
    %6 = vector.load %arg4[%c0_8, %c0_9, %c0_10] : memref<3x1x32xf32, #tpu.memory_space<vmem>>, vector<1x1x32xf32>
    %7 = vector.shape_cast %6 : vector<1x1x32xf32> to vector<1x32xf32>
    %cst = arith.constant 0.000000e+00 : f32
    %8 = vector.broadcast %cst : f32 to vector<16x32xf32>
    %9 = arith.cmpf oge, %1, %8 : vector<16x32xf32>
    %10 = vector.broadcast %7 : vector<1x32xf32> to vector<16x32xf32>
    %11 = arith.mulf %10, %1 : vector<16x32xf32>
    %12 = arith.select %9, %1, %11 : vector<16x32xi1>, vector<16x32xf32>
    %cst_11 = arith.constant 0.000000e+00 : f32
    %13 = vector.broadcast %cst_11 : f32 to vector<1x32xf32>
    %14 = tpu.concatenate %13, %12, %13 in 0 : vector<1x32xf32>, vector<16x32xf32>, vector<1x32xf32> -> vector<18x32xf32>
    %15 = vector.extract_strided_slice %14 {offsets = [0, 0], sizes = [16, 32], strides = [1, 1]} : vector<18x32xf32> to vector<16x32xf32>
    %16 = vector.extract_strided_slice %14 {offsets = [1, 0], sizes = [16, 32], strides = [1, 1]} : vector<18x32xf32> to vector<16x32xf32>
    %17 = vector.extract_strided_slice %14 {offsets = [2, 0], sizes = [16, 32], strides = [1, 1]} : vector<18x32xf32> to vector<16x32xf32>
    %18 = tpu.concatenate %15, %16, %17 in 1 : vector<16x32xf32>, vector<16x32xf32>, vector<16x32xf32> -> vector<16x96xf32>
    %cst_12 = arith.constant dense<0.000000e+00> : vector<16x32xf32>
    %19 = tpu.matmul %18, %3, %cst_12 {dimension_numbers = #tpu.dot_dimension_numbers<[1], [0], [0], [1], [0, 0, 1, 1], [], []>} : vector<16x96xf32>, vector<96x32xf32>, vector<16x32xf32> -> vector<16x32xf32>
    %20 = vector.broadcast %5 : vector<1x32xf32> to vector<16x32xf32>
    %21 = arith.addf %19, %20 : vector<16x32xf32>
    %22 = arith.addf %1, %21 : vector<16x32xf32>
    %c1 = arith.constant 1 : index
    %c0_13 = arith.constant 0 : index
    %c0_14 = arith.constant 0 : index
    %23 = vector.load %arg2[%c1, %c0_13, %c0_14] : memref<3x96x32xf32, #tpu.memory_space<vmem>>, vector<1x96x32xf32>
    %24 = vector.shape_cast %23 : vector<1x96x32xf32> to vector<96x32xf32>
    %c1_15 = arith.constant 1 : index
    %c0_16 = arith.constant 0 : index
    %c0_17 = arith.constant 0 : index
    %25 = vector.load %arg3[%c1_15, %c0_16, %c0_17] : memref<3x1x32xf32, #tpu.memory_space<vmem>>, vector<1x1x32xf32>
    %26 = vector.shape_cast %25 : vector<1x1x32xf32> to vector<1x32xf32>
    %c1_18 = arith.constant 1 : index
    %c0_19 = arith.constant 0 : index
    %c0_20 = arith.constant 0 : index
    %27 = vector.load %arg4[%c1_18, %c0_19, %c0_20] : memref<3x1x32xf32, #tpu.memory_space<vmem>>, vector<1x1x32xf32>
    %28 = vector.shape_cast %27 : vector<1x1x32xf32> to vector<1x32xf32>
    %cst_21 = arith.constant 0.000000e+00 : f32
    %29 = vector.broadcast %cst_21 : f32 to vector<16x32xf32>
    %30 = arith.cmpf oge, %22, %29 : vector<16x32xf32>
    %31 = vector.broadcast %28 : vector<1x32xf32> to vector<16x32xf32>
    %32 = arith.mulf %31, %22 : vector<16x32xf32>
    %33 = arith.select %30, %22, %32 : vector<16x32xi1>, vector<16x32xf32>
    %cst_22 = arith.constant 0.000000e+00 : f32
    %34 = vector.broadcast %cst_22 : f32 to vector<2x32xf32>
    %35 = tpu.concatenate %34, %33, %34 in 0 : vector<2x32xf32>, vector<16x32xf32>, vector<2x32xf32> -> vector<20x32xf32>
    %36 = vector.extract_strided_slice %35 {offsets = [0, 0], sizes = [16, 32], strides = [1, 1]} : vector<20x32xf32> to vector<16x32xf32>
    %37 = vector.extract_strided_slice %35 {offsets = [2, 0], sizes = [16, 32], strides = [1, 1]} : vector<20x32xf32> to vector<16x32xf32>
    %38 = vector.extract_strided_slice %35 {offsets = [4, 0], sizes = [16, 32], strides = [1, 1]} : vector<20x32xf32> to vector<16x32xf32>
    %39 = tpu.concatenate %36, %37, %38 in 1 : vector<16x32xf32>, vector<16x32xf32>, vector<16x32xf32> -> vector<16x96xf32>
    %cst_23 = arith.constant dense<0.000000e+00> : vector<16x32xf32>
    %40 = tpu.matmul %39, %24, %cst_23 {dimension_numbers = #tpu.dot_dimension_numbers<[1], [0], [0], [1], [0, 0, 1, 1], [], []>} : vector<16x96xf32>, vector<96x32xf32>, vector<16x32xf32> -> vector<16x32xf32>
    %41 = vector.broadcast %26 : vector<1x32xf32> to vector<16x32xf32>
    %42 = arith.addf %40, %41 : vector<16x32xf32>
    %43 = arith.addf %22, %42 : vector<16x32xf32>
    %c2 = arith.constant 2 : index
    %c0_24 = arith.constant 0 : index
    %c0_25 = arith.constant 0 : index
    %44 = vector.load %arg2[%c2, %c0_24, %c0_25] : memref<3x96x32xf32, #tpu.memory_space<vmem>>, vector<1x96x32xf32>
    %45 = vector.shape_cast %44 : vector<1x96x32xf32> to vector<96x32xf32>
    %c2_26 = arith.constant 2 : index
    %c0_27 = arith.constant 0 : index
    %c0_28 = arith.constant 0 : index
    %46 = vector.load %arg3[%c2_26, %c0_27, %c0_28] : memref<3x1x32xf32, #tpu.memory_space<vmem>>, vector<1x1x32xf32>
    %47 = vector.shape_cast %46 : vector<1x1x32xf32> to vector<1x32xf32>
    %c2_29 = arith.constant 2 : index
    %c0_30 = arith.constant 0 : index
    %c0_31 = arith.constant 0 : index
    %48 = vector.load %arg4[%c2_29, %c0_30, %c0_31] : memref<3x1x32xf32, #tpu.memory_space<vmem>>, vector<1x1x32xf32>
    %49 = vector.shape_cast %48 : vector<1x1x32xf32> to vector<1x32xf32>
    %cst_32 = arith.constant 0.000000e+00 : f32
    %50 = vector.broadcast %cst_32 : f32 to vector<16x32xf32>
    %51 = arith.cmpf oge, %43, %50 : vector<16x32xf32>
    %52 = vector.broadcast %49 : vector<1x32xf32> to vector<16x32xf32>
    %53 = arith.mulf %52, %43 : vector<16x32xf32>
    %54 = arith.select %51, %43, %53 : vector<16x32xi1>, vector<16x32xf32>
    %cst_33 = arith.constant 0.000000e+00 : f32
    %55 = vector.broadcast %cst_33 : f32 to vector<4x32xf32>
    %56 = tpu.concatenate %55, %54, %55 in 0 : vector<4x32xf32>, vector<16x32xf32>, vector<4x32xf32> -> vector<24x32xf32>
    %57 = vector.extract_strided_slice %56 {offsets = [0, 0], sizes = [16, 32], strides = [1, 1]} : vector<24x32xf32> to vector<16x32xf32>
    %58 = vector.extract_strided_slice %56 {offsets = [4, 0], sizes = [16, 32], strides = [1, 1]} : vector<24x32xf32> to vector<16x32xf32>
    %59 = vector.extract_strided_slice %56 {offsets = [8, 0], sizes = [16, 32], strides = [1, 1]} : vector<24x32xf32> to vector<16x32xf32>
    %60 = tpu.concatenate %57, %58, %59 in 1 : vector<16x32xf32>, vector<16x32xf32>, vector<16x32xf32> -> vector<16x96xf32>
    %cst_34 = arith.constant dense<0.000000e+00> : vector<16x32xf32>
    %61 = tpu.matmul %60, %45, %cst_34 {dimension_numbers = #tpu.dot_dimension_numbers<[1], [0], [0], [1], [0, 0, 1, 1], [], []>} : vector<16x96xf32>, vector<96x32xf32>, vector<16x32xf32> -> vector<16x32xf32>
    %62 = vector.broadcast %47 : vector<1x32xf32> to vector<16x32xf32>
    %63 = arith.addf %61, %62 : vector<16x32xf32>
    %64 = arith.addf %43, %63 : vector<16x32xf32>
    %c0_35 = arith.constant 0 : index
    %c0_36 = arith.constant 0 : index
    %65 = vector.load %arg5[%c0_35, %c0_36] : memref<96x32xf32, #tpu.memory_space<vmem>>, vector<96x32xf32>
    %c0_37 = arith.constant 0 : index
    %c0_38 = arith.constant 0 : index
    %66 = vector.load %arg6[%c0_37, %c0_38] : memref<1x32xf32, #tpu.memory_space<vmem>>, vector<1x32xf32>
    %cst_39 = arith.constant 0.000000e+00 : f32
    %67 = vector.broadcast %cst_39 : f32 to vector<1x32xf32>
    %68 = tpu.concatenate %67, %64, %67 in 0 : vector<1x32xf32>, vector<16x32xf32>, vector<1x32xf32> -> vector<18x32xf32>
    %69 = vector.extract_strided_slice %68 {offsets = [0, 0], sizes = [16, 32], strides = [1, 1]} : vector<18x32xf32> to vector<16x32xf32>
    %70 = vector.extract_strided_slice %68 {offsets = [1, 0], sizes = [16, 32], strides = [1, 1]} : vector<18x32xf32> to vector<16x32xf32>
    %71 = vector.extract_strided_slice %68 {offsets = [2, 0], sizes = [16, 32], strides = [1, 1]} : vector<18x32xf32> to vector<16x32xf32>
    %72 = tpu.concatenate %69, %70, %71 in 1 : vector<16x32xf32>, vector<16x32xf32>, vector<16x32xf32> -> vector<16x96xf32>
    %cst_40 = arith.constant dense<0.000000e+00> : vector<16x32xf32>
    %73 = tpu.matmul %72, %65, %cst_40 {dimension_numbers = #tpu.dot_dimension_numbers<[1], [0], [0], [1], [0, 0, 1, 1], [], []>} : vector<16x96xf32>, vector<96x32xf32>, vector<16x32xf32> -> vector<16x32xf32>
    %74 = vector.broadcast %66 : vector<1x32xf32> to vector<16x32xf32>
    %75 = arith.addf %73, %74 : vector<16x32xf32>
    %c0_41 = arith.constant 0 : index
    %c0_42 = arith.constant 0 : index
    %c0_43 = arith.constant 0 : index
    %76 = vector.load %arg7[%c0_41, %c0_42, %c0_43] : memref<1x16x32xf32, #tpu.memory_space<vmem>>, vector<1x16x32xf32>
    %77 = vector.shape_cast %76 : vector<1x16x32xf32> to vector<16x32xf32>
    %78 = vector.shape_cast %75 : vector<16x32xf32> to vector<1x16x32xf32>
    tpu.vector_store %arg7[%c0_41, %c0_42, %c0_43], %78 {strides = array<i32>} : memref<1x16x32xf32, #tpu.memory_space<vmem>>, vector<1x16x32xf32>,
    return
  }
  func.func @transform_0(%arg0: i32) -> (i32, i32, i32) {
    %c0_i32 = arith.constant 0 : i32
    %c0_i32_0 = arith.constant 0 : i32
    %c0_i32_1 = arith.constant 0 : i32
    return %arg0, %c0_i32, %c0_i32_0 : i32, i32, i32
  }
  func.func @transform_1(%arg0: i32) -> (i32, i32, i32) {
    %c0_i32 = arith.constant 0 : i32
    %c0_i32_0 = arith.constant 0 : i32
    %c0_i32_1 = arith.constant 0 : i32
    %c0_i32_2 = arith.constant 0 : i32
    return %c0_i32, %c0_i32_0, %c0_i32_1 : i32, i32, i32
  }
  func.func @transform_2(%arg0: i32) -> (i32, i32, i32) {
    %c0_i32 = arith.constant 0 : i32
    %c0_i32_0 = arith.constant 0 : i32
    %c0_i32_1 = arith.constant 0 : i32
    %c0_i32_2 = arith.constant 0 : i32
    return %c0_i32, %c0_i32_0, %c0_i32_1 : i32, i32, i32
  }
  func.func @transform_3(%arg0: i32) -> (i32, i32, i32) {
    %c0_i32 = arith.constant 0 : i32
    %c0_i32_0 = arith.constant 0 : i32
    %c0_i32_1 = arith.constant 0 : i32
    %c0_i32_2 = arith.constant 0 : i32
    return %c0_i32, %c0_i32_0, %c0_i32_1 : i32, i32, i32
  }
  func.func @transform_4(%arg0: i32) -> (i32, i32) {
    %c0_i32 = arith.constant 0 : i32
    %c0_i32_0 = arith.constant 0 : i32
    %c0_i32_1 = arith.constant 0 : i32
    return %c0_i32, %c0_i32_0 : i32, i32
  }
  func.func @transform_5(%arg0: i32) -> (i32, i32) {
    %c0_i32 = arith.constant 0 : i32
    %c0_i32_0 = arith.constant 0 : i32
    %c0_i32_1 = arith.constant 0 : i32
    return %c0_i32, %c0_i32_0 : i32, i32
  }
  func.func @transform_6(%arg0: i32) -> (i32, i32, i32) {
    %c0_i32 = arith.constant 0 : i32
    %c0_i32_0 = arith.constant 0 : i32
    %c0_i32_1 = arith.constant 0 : i32
    return %arg0, %c0_i32, %c0_i32_0 : i32, i32, i32
  }
}

</mosaic_0001>

<bundles_post_ra>
// kernel: tpu_custom_call.1
= control target key start
LH: loop header
LB: loop body
LE: loop exit
PB: predicated region body
PF: predicated region fallthrough
CT: control target
= control target key end

     0   :  { %11 = vsyncpa [#allocation3], 0  ;;  %s1670_s0 = inlined_call_operand.vmem [shape: f32[2,16,32], index: 0, kind: input, shape index: {}]   ;;  %s1671_s1 = inlined_call_operand.vmem [shape: f32[3,96,32], index: 1, kind: input, shape index: {}]   ;;  %s1672_s2 = inlined_call_operand.vmem [shape: f32[3,1,32], index: 2, kind: input, shape index: {}]   ;;  %s1673_s3 = inlined_call_operand.vmem [shape: f32[3,1,32], index: 3, kind: input, shape index: {}]   ;;  %s1674_s4 = inlined_call_operand.vmem [shape: f32[96,32], index: 4, kind: input, shape index: {}]   ;;  %s1675_s5 = inlined_call_operand.vmem [shape: f32[1,32], index: 5, kind: input, shape index: {}]   ;;  %s1676_s6 = inlined_call_operand.hbm [shape: f32[2,16,32], index: 6, kind: output, shape index: {}]  }
   0x1   :  { %13 = vsyncpa [#allocation3 + $0x1], 0  ;;  %s1302_s21 = smov 0   ;;  %s1304_s22 = smov 0  }
   0x2   :  { %s1306_s23 = smov 0   ;;  %s1308_s24 = smov 0  }
   0x3 LB: > { %s1323_s25 = sadd.s32 4294967295, %s1260_s24   ;;  %s936_s26 = sadd.s32 4294967294, %s1260_s24   ;;  %s1260_s24 = sphi %s1308_s24, %s1682_s24   ;;  %s1256_s23 = sphi %s1306_s23, %s1681_s23   ;;  %s1252_s22 = sphi %s1304_s22, %s1680_s22   ;;  %s1248_s21 = sphi %s1302_s21, %s1679_s21  }
   0x4   : > { %s1327_s27 = sadd.s32 1, %s1260_s24   ;;  %s157_s28 = sadd.s32 1, %s1256_s23 }
   0x5   : > { %s154_s29 = ssub.s32 %s1260_s24, %s1327_s27  ;;  %p167_p0 = scmp.ne.s32.totalorder %s1256_s23, %s1252_s22 }
   0x6   : > { %p155_p1 = scmp.eq.s32.totalorder %s154_s29, 0  ;;  %p168_p2 = scmp.eq.s32.totalorder %s1323_s25, 1 }
   0x7   : > { %p173_p3 = scmp.ne.s32.totalorder %s1252_s22, %s1248_s21  ;;  %p174_p4 = scmp.eq.s32.totalorder %s936_s26, 1 }
   0x8   : > { %s1338_s30 = scalar_select %p155_p1, %s1256_s23, %s157_s28  }
   0x9   : > { %p1340_p5 = por %p168_p2, %p167_p0  ;;  %p1344_p6 = por %p174_p4, %p173_p3 }
   0xa   : > { %p939_p7 = scmp.ge.s32.totalorder %s1260_s24, 1  ;;  %p215_p8 = scmp.lt.s32.totalorder %s1260_s24, 3 }
   0xc   : > { %p216_p9 = pnand %p939_p7, %p215_p8 }
   0xd   : > { %p245_p10 = scmp.lt.s32.totalorder (!%p216_p9), %s1323_s25, 1  ;;  %s1262_s17 = smov (!%p216_p9), 32  }
   0xe   : > { %219 = sbr.rel (%p216_p9) target bundleno = 1349 (0x545), region = 44  ;;  %s1263_s18 = smov (!%p216_p9), 64  }
   0xf   : > { %s992_s28 = sshll.u32 (!%p216_p9), %s1323_s25, 8  ;;  %s1264_s12 = smov (!%p216_p9), [#allocation2]  }
  0x10   : > { %s1626_s10 = scalar_lea.hbm (!%p216_p9), %s1676_s6, %s992_s28 }
  0x13   : > { %v263_v0 = vld [vmem:[%s1671_s1 + $0x58] sm:$0xff]  ;;  %v262_v1 = vld [vmem:[%s1671_s1 + $0x50] sm:$0xff]  ;;  %s246_s13 = scalar_select %p245_p10, %s1323_s25, 1  ;;  %v261_v2 = vld [vmem:[%s1671_s1 + $0x48] sm:$0xff]  ;;  %vm280_vm2 = vcmask 1040384   ;;  %vm291_vm3 = vcmask 1046528  }
  0x14   : > { %1049 = vmatprep.subr.mxu0 %v263_v0  ;;  %v943_v3 = vld [vmem:[%s1673_s3] ss:$0 sm:$0xff]  ;;  %v259_v9 = vld [vmem:[%s1671_s1 + $0x38] sm:$0xff]  ;;  %v258_v12 = vld [vmem:[%s1671_s1 + $0x30] sm:$0xff]  ;;  %vm303_vm4 = vcmask 1045504   ;;  %vm315_vm5 = vcmask 261120  }
  0x15   : > { %1050 = vmatpush3.msra.mxu0 %v263_v0  ;;  %s991_s16 = sshll.u32 %s246_s13, 4  ;;  %v260_v4 = vld [vmem:[%s1671_s1 + $0x40] sm:$0xff]  ;;  %v257_v15 = vld [vmem:[%s1671_s1 + $0x28] sm:$0xff]  ;;  %v255_v28 = vld [vmem:[%s1671_s1 + $0x18] sm:$0xff]  ;;  %vm318_vm6 = vcmask 523264   ;;  %vm327_vm7 = vcmask 785408  }
  0x16   : > { %1051 = vmatprep.subr.mxu0 %v262_v1  ;;  %s249_s26 = scalar_lea.vmem %s1670_s0, %s991_s16  ;;  %v256_v25 = vld [vmem:[%s1671_s1 + $0x20] sm:$0xff]  ;;  %v254_v31 = vld [vmem:[%s1671_s1 + $0x10] sm:$0xff]  ;;  %v253_v32 = vld [vmem:[%s1671_s1 + $0x8] sm:$0xff]  ;;  %vm442_vm10 = vcmask 1041408   ;;  %vm464_vm11 = vcmask 1043456   ;;  %s1204_s13 = sshll.u32 %s1264_s12, 4  ;;  %s1205_s13 = int_to_ptr.vmem [resolvable:$false] %s1204_s13 }
  0x17   : > { %1052 = vmatpush3.msra.mxu0 %v262_v1  ;;  %v1370_v5 = vld [vmem:[%s249_s26] sm:$0xff]  ;;  %v1372_v6 = vld [vmem:[%s249_s26 + $0x8] sm:$0xff]  ;;  %v958_v42 = vld [vmem:[%s1671_s1 + $0xb8] sm:$0xff]  ;;  %s1206_s14 = scalar_lea.vmem %s1205_s13, 512 }
  0x18   : > { %1053 = vmatprep.subr.mxu0 %v261_v2  ;;  %vm266_vm0 = vcmp.ge.f32.partialorder %v1370_v5, 0.0  ;;  %vm267_vm1 = vcmp.ge.f32.partialorder %v1372_v6, 0.0  ;;  %v274_v7 = vmul.f32 %v943_v3, %v1370_v5  ;;  %v275_v8 = vmul.f32 %v943_v3, %v1372_v6  ;;  %v252_v33 = vld [vmem:[%s1671_s1] sm:$0xff]  ;;  %v957_v43 = vld [vmem:[%s1671_s1 + $0xb0] sm:$0xff]  ;;  %1076 = vmatprep.subr.mxu1 %v958_v42  ;;  %v956_v44 = vld [vmem:[%s1671_s1 + $0xa8] sm:$0xff] }
  0x19   : > { %1054 = vmatpush3.msra.mxu0 %v261_v2  ;;  %1077 = vmatpush3.msra.mxu1 %v958_v42  ;;  %v955_v45 = vld [vmem:[%s1671_s1 + $0xa0] sm:$0xff]  ;;  %v954_v46 = vld [vmem:[%s1671_s1 + $0x98] sm:$0xff]  ;;  %v953_v47 = vld [vmem:[%s1671_s1 + $0x90] sm:$0xff] }
  0x1a   : > { %1055 = vmatprep.subr.mxu0 %v260_v4  ;;  %v276_v10 = vsel %vm266_vm0, %v1370_v5, %v274_v7  ;;  %v277_v11 = vsel %vm267_vm1, %v1372_v6, %v275_v8  ;;  %1078 = vmatprep.subr.mxu1 %v957_v43  ;;  %v952_v48 = vld [vmem:[%s1671_s1 + $0x88] sm:$0xff]  ;;  %v951_v49 = vld [vmem:[%s1671_s1 + $0x80] sm:$0xff]  ;;  %v950_v50 = vld [vmem:[%s1671_s1 + $0x78] sm:$0xff] }
  0x1b   : > { %1056 = vmatpush3.msra.mxu0 %v260_v4  ;;  %v281_v13 = vrot.slane %v276_v10, 7  ;;  %v282_v14 = vrot.slane %v277_v11, 7  ;;  %1079 = vmatpush3.msra.mxu1 %v957_v43  ;;  %v944_v51 = vld [vmem:[%s1672_s2] ss:$0 sm:$0xff]  ;;  %v961_v54 = vld [vmem:[%s1673_s3 + $0x1] ss:$0 sm:$0xff] }
  0x1c   : > { %1057 = vmatprep.subr.mxu0 %v259_v9  ;;  %1080 = vmatprep.subr.mxu1 %v956_v44  ;;  %v949_v56 = vld [vmem:[%s1671_s1 + $0x70] sm:$0xff]  ;;  %v948_v59 = vld [vmem:[%s1671_s1 + $0x68] sm:$0xff]  ;;  %v947_v62 = vld [vmem:[%s1671_s1 + $0x60] sm:$0xff] }
  0x1d   : > { %1058 = vmatpush3.msra.mxu0 %v259_v9  ;;  %v283_v16 = vsel %vm280_vm2, %v281_v13, %v282_v14  ;;  %v287_v17 = vsel %vm280_vm2, 0.0, %v281_v13  ;;  %v288_v18 = vsel %vm280_vm2, %v282_v14, 0.0  ;;  %1081 = vmatpush3.msra.mxu1 %v956_v44  ;;  %v966_v42 = vld [vmem:[%s1671_s1 + $0xc8] sm:$0xff] }
  0x1e   : > { %1059 = vmatprep.subr.mxu0 %v258_v12  ;;  %v292_v19 = vrot.slane %v287_v17, 1  ;;  %v293_v20 = vrot.slane %v283_v16, 1  ;;  %v304_v21 = vrot.slane %v287_v17, 2  ;;  %v305_v22 = vrot.slane %v283_v16, 2  ;;  %1082 = vmatprep.subr.mxu1 %v955_v45 }
  0x1f   : > { %1060 = vmatpush3.msra.mxu0 %v258_v12  ;;  %v295_v23 = vrot.slane %v288_v18, 1  ;;  %v307_v24 = vrot.slane %v288_v18, 2  ;;  %1083 = vmatpush3.msra.mxu1 %v955_v45  ;;  %v965_v45 = vld [vmem:[%s1671_s1 + $0xc0] sm:$0xff] }
  0x20   : > { %1061 = vmatprep.subr.mxu0 %v257_v15  ;;  %v294_v26 = vsel %vm291_vm3, %v292_v19, %v293_v20  ;;  %v306_v27 = vsel %vm303_vm4, %v304_v21, %v305_v22  ;;  %1084 = vmatprep.subr.mxu1 %v954_v46 }
  0x21   : > { %1062 = vmatpush3.msra.mxu0 %v257_v15  ;;  %297 = vrot.lane.b32.xlu0 %v294_v26, %s1262_s17  ;;  %v296_v29 = vsel %vm291_vm3, %v293_v20, %v295_v23  ;;  %v308_v30 = vsel %vm303_vm4, %v305_v22, %v307_v24  ;;  %v975_v26 = vld [vmem:[%s1671_s1 + $0x110] sm:$0xff] }
  0x22   : > { %309 = vrot.lane.b32.xlu1 %v306_v27, %s1263_s18  ;;  %1063 = vmatprep.subr.mxu0 %v256_v25  ;;  %v974_v27 = vld [vmem:[%s1671_s1 + $0x108] sm:$0xff] }
  0x23   : > { %1064 = vmatpush3.msra.mxu0 %v256_v25  ;;  %1085 = vmatpush3.msra.mxu1 %v954_v46  ;;  %v976_v25 = vld [vmem:[%s1671_s1 + $0x118] sm:$0xff] }
  0x24   : > { %1065 = vmatprep.subr.mxu0 %v255_v28  ;;  %1086 = vmatprep.subr.mxu1 %v953_v47 }
  0x25   : > { %299 = vrot.lane.b32.xlu0 %v296_v29, %s1262_s17  ;;  %1066 = vmatpush3.msra.mxu0 %v255_v28  ;;  %v973_v28 = vld [vmem:[%s1671_s1 + $0x100] sm:$0xff]  ;;  %v972_v29 = vld [vmem:[%s1671_s1 + $0xf8] sm:$0xff] }
  0x26   : > { %311 = vrot.lane.b32.xlu1 %v308_v30, %s1263_s18  ;;  %1067 = vmatprep.subr.mxu0 %v254_v31  ;;  %v971_v30 = vld [vmem:[%s1671_s1 + $0xf0] sm:$0xff] }
  0x27   : > { %1068 = vmatpush3.msra.mxu0 %v254_v31  ;;  %1087 = vmatpush3.msra.mxu1 %v953_v47  ;;  %v970_v31 = vld [vmem:[%s1671_s1 + $0xe8] sm:$0xff] }
  0x28   : > { %1069 = vmatprep.subr.mxu0 %v253_v32  ;;  %1088 = vmatprep.subr.mxu1 %v952_v48 }
  0x29   : > { %1070 = vmatpush3.msra.mxu0 %v253_v32  ;;  %1089 = vmatpush3.msra.mxu1 %v952_v48  ;;  %v969_v32 = vld [vmem:[%s1671_s1 + $0xe0] sm:$0xff] }
  0x2a   : > { %1071 = vmatprep.subr.mxu0 %v252_v33  ;;  %1090 = vmatprep.subr.mxu1 %v951_v49 }
  0x2b   : > { %1072 = vmatpush3.msra.mxu0 %v252_v33  ;;  %1091 = vmatpush3.msra.mxu1 %v951_v49  ;;  %v968_v33 = vld [vmem:[%s1671_s1 + $0xd8] sm:$0xff] }
  0x2c   : > { %1092 = vmatprep.subr.mxu1 %v950_v50  ;;  %1103 = vmatprep.subr.mxu0 %v976_v25 }
  0x2d   : > { %1093 = vmatpush3.msra.mxu1 %v950_v50 }
  0x2e   : > { %1094 = vmatprep.subr.mxu1 %v949_v56 }
  0x2f   : > { %1095 = vmatpush3.msra.mxu1 %v949_v56 }
  0x30   : > { %1096 = vmatprep.subr.mxu1 %v948_v59 }
  0x31   : > { %1097 = vmatpush3.msra.mxu1 %v948_v59 }
  0x32   : > { %1098 = vmatprep.subr.mxu1 %v947_v62 }
  0x33   : > { %1099 = vmatpush3.msra.mxu1 %v947_v62 }
  0x93   : > { %v298_v34 = vpop.permute.xlu0 %297 }
  0x94   : > { %v310_v35 = vpop.permute.xlu1 %309  ;;  %v316_v36 = vsel %vm315_vm5, %v287_v17, %v298_v34  ;;  %v962_v34 = vld [vmem:[%s1672_s2 + $0x1] ss:$0 sm:$0xff] }
  0x95   : > { %v319_v37 = vsel %vm318_vm6, %v316_v36, %v310_v35 }
  0x96   : > { %1073 = vmatprep.mubr.msk.f32.mxu0 %vm327_vm7, %v319_v37  ;;  %v979_v37 = vld [vmem:[%s1673_s3 + $0x2] ss:$0 sm:$0xff] }
  0x97   : > { %v300_v38 = vpop.permute.xlu0 %299 }
  0x98   : > { %v312_v39 = vpop.permute.xlu1 %311  ;;  %v317_v40 = vsel %vm315_vm5, %v283_v16, %v300_v38 }
  0x99   : > { %v320_v41 = vsel %vm318_vm6, %v317_v40, %v312_v39  ;;  %v967_v39 = vld [vmem:[%s1671_s1 + $0xd0] sm:$0xff] }
  0x9a   : > { %1074 = vmatmul.mubr.msk.f32.vlgmr.msra.gmra.mxu0 %vm327_vm7, %v320_v41 }
  0x9b   : > { %1104 = vmatpush3.msra.mxu0 %v976_v25 }
  0x9c   : > { %1105 = vmatprep.subr.mxu0 %v975_v26 }
  0x9d   : > { %1106 = vmatpush3.msra.mxu0 %v975_v26 }
  0x9e   : > { %1107 = vmatprep.subr.mxu0 %v974_v27 }
  0x9f   : > { %1108 = vmatpush3.msra.mxu0 %v974_v27 }
  0xa0   : > { %1109 = vmatprep.subr.mxu0 %v973_v28 }
  0xa1   : > { %1110 = vmatpush3.msra.mxu0 %v973_v28 }
  0xa2   : > { %1111 = vmatprep.subr.mxu0 %v972_v29 }
  0xa3   : > { %1112 = vmatpush3.msra.mxu0 %v972_v29 }
  0xa4   : > { %1113 = vmatprep.subr.mxu0 %v971_v30 }
  0xa5   : > { %1114 = vmatpush3.msra.mxu0 %v971_v30 }
  0xa6   : > { %1115 = vmatprep.subr.mxu0 %v970_v31 }
  0xa7   : > { %1116 = vmatpush3.msra.mxu0 %v970_v31 }
  0xa8   : > { %1117 = vmatprep.subr.mxu0 %v969_v32 }
  0xa9   : > { %1118 = vmatpush3.msra.mxu0 %v969_v32 }
  0xaa   : > { %1119 = vmatprep.subr.mxu0 %v968_v33 }
  0xab   : > { %1120 = vmatpush3.msra.mxu0 %v968_v33 }
  0xac   : > { %1121 = vmatprep.subr.mxu0 %v967_v39 }
  0xad   : > { %1122 = vmatpush3.msra.mxu0 %v967_v39 }
  0xae   : > { %1123 = vmatprep.subr.mxu0 %v966_v42 }
  0xaf   : > { %1124 = vmatpush3.msra.mxu0 %v966_v42 }
  0xb0   : > { %1125 = vmatprep.subr.mxu0 %v965_v45 }
  0xb1   : > { %1126 = vmatpush3.msra.mxu0 %v965_v45  ;;  %v983_v45 = vld [vmem:[%s1675_s5] ss:$0 sm:$0xff] }
 0x15a   : > { %v1075_v52 = vpop.f32.mrf.mxu0 }
 0x15b   : > { %v406_v53 = vadd.f32 %v1075_v52, %v944_v51 }
 0x15c   : > { %v400_v55 = vpop.f32.mrf.mxu0 }
 0x15d   : > { %v1458_v57 = vadd.f32 %v406_v53, %v1372_v6  ;;  %v401_v58 = vadd.f32 %v944_v51, %v400_v55 }
 0x15f   : > { %vm429_vm8 = vcmp.ge.f32.partialorder %v1458_v57, 0.0  ;;  %v437_v60 = vmul.f32 %v961_v54, %v1458_v57  ;;  %v1466_v61 = vadd.f32 %v401_v58, %v1370_v5 }
 0x161   : > { %vm428_vm9 = vcmp.ge.f32.partialorder %v1466_v61, 0.0  ;;  %v436_v63 = vmul.f32 %v961_v54, %v1466_v61  ;;  %v439_v0 = vsel %vm429_vm8, %v1458_v57, %v437_v60 }
 0x162   : > { %v444_v1 = vrot.slane %v439_v0, 6 }
 0x163   : > { %v438_v2 = vsel %vm428_vm9, %v1466_v61, %v436_v63 }
 0x164   : > { %v443_v3 = vrot.slane %v438_v2, 6  ;;  %v450_v4 = vsel %vm442_vm10, %v444_v1, 0.0 }
 0x165   : > { %v456_v8 = vrot.slane %v450_v4, 2  ;;  %v468_v14 = vrot.slane %v450_v4, 4  ;;  %v730_v4 = vld [vmem:[%s1674_s4 + $0x50] sm:$0xff] }
 0x166   : > { %v445_v5 = vsel %vm442_vm10, %v443_v3, %v444_v1  ;;  %v449_v6 = vsel %vm442_vm10, 0.0, %v443_v3  ;;  %v731_v3 = vld [vmem:[%s1674_s4 + $0x58] sm:$0xff] }
 0x167   : > { %v454_v7 = vrot.slane %v445_v5, 2  ;;  %v453_v9 = vrot.slane %v449_v6, 2  ;;  %v466_v12 = vrot.slane %v445_v5, 4  ;;  %v465_v13 = vrot.slane %v449_v6, 4  ;;  %1130 = vmatprep.subr.mxu1 %v731_v3 }
 0x169   : > { %v457_v10 = vsel %vm303_vm4, %v454_v7, %v456_v8  ;;  %v455_v11 = vsel %vm303_vm4, %v453_v9, %v454_v7  ;;  %v469_v15 = vsel %vm464_vm11, %v466_v12, %v468_v14  ;;  %v467_v16 = vsel %vm464_vm11, %v465_v13, %v466_v12  ;;  %v727_v7 = vld [vmem:[%s1674_s4 + $0x38] sm:$0xff]  ;;  %v726_v8 = vld [vmem:[%s1674_s4 + $0x30] sm:$0xff]  ;;  %v725_v9 = vld [vmem:[%s1674_s4 + $0x28] sm:$0xff] }
 0x16a   : > { %460 = vrot.lane.b32.xlu1 %v457_v10, %s1262_s17  ;;  %458 = vrot.lane.b32.xlu0 %v455_v11, %s1262_s17  ;;  %v724_v10 = vld [vmem:[%s1674_s4 + $0x20] sm:$0xff]  ;;  %v723_v11 = vld [vmem:[%s1674_s4 + $0x18] sm:$0xff] }
 0x16b   : > { %v980_v12 = vld [vmem:[%s1672_s2 + $0x2] ss:$0 sm:$0xff]  ;;  %v722_v13 = vld [vmem:[%s1674_s4 + $0x10] sm:$0xff] }
 0x16e   : > { %472 = vrot.lane.b32.xlu1 %v469_v15, %s1263_s18  ;;  %470 = vrot.lane.b32.xlu0 %v467_v16, %s1263_s18  ;;  %v721_v15 = vld [vmem:[%s1674_s4 + $0x8] sm:$0xff] }
 0x1dc   : > { %v461_v17 = vpop.permute.xlu1 %460  ;;  %v459_v18 = vpop.permute.xlu0 %458 }
 0x1dd   : > { %v477_v19 = vsel %vm315_vm5, %v445_v5, %v461_v17  ;;  %v476_v20 = vsel %vm315_vm5, %v449_v6, %v459_v18  ;;  %v729_v5 = vld [vmem:[%s1674_s4 + $0x48] sm:$0xff]  ;;  %v728_v6 = vld [vmem:[%s1674_s4 + $0x40] sm:$0xff] }
 0x1e0   : > { %v473_v21 = vpop.permute.xlu1 %472  ;;  %v471_v22 = vpop.permute.xlu0 %470 }
 0x1e1   : > { %v479_v23 = vsel %vm318_vm6, %v477_v19, %v473_v21  ;;  %v478_v24 = vsel %vm318_vm6, %v476_v20, %v471_v22  ;;  %v720_v20 = vld [vmem:[%s1674_s4] sm:$0xff] }
 0x1e2   : > { %1100 = vmatprep.mubr.msk.f32.mxu1 %vm327_vm7, %v478_v24 }
 0x1e3   : > { %1101 = vmatmul.mubr.msk.f32.vlgmr.msra.gmra.mxu1 %vm327_vm7, %v479_v23 }
 0x1e4   : > { %1131 = vmatpush3.msra.mxu1 %v731_v3 }
 0x1e5   : > { %1132 = vmatprep.subr.mxu1 %v730_v4 }
 0x1e6   : > { %1133 = vmatpush3.msra.mxu1 %v730_v4 }
 0x1e7   : > { %1134 = vmatprep.subr.mxu1 %v729_v5 }
 0x1e8   : > { %1135 = vmatpush3.msra.mxu1 %v729_v5 }
 0x1e9   : > { %1136 = vmatprep.subr.mxu1 %v728_v6 }
 0x1ea   : > { %1137 = vmatpush3.msra.mxu1 %v728_v6 }
 0x1eb   : > { %1138 = vmatprep.subr.mxu1 %v727_v7 }
 0x1ec   : > { %1139 = vmatpush3.msra.mxu1 %v727_v7 }
 0x1ed   : > { %1140 = vmatprep.subr.mxu1 %v726_v8 }
 0x1ee   : > { %1141 = vmatpush3.msra.mxu1 %v726_v8 }
 0x1ef   : > { %1142 = vmatprep.subr.mxu1 %v725_v9 }
 0x1f0   : > { %1143 = vmatpush3.msra.mxu1 %v725_v9 }
 0x1f1   : > { %1144 = vmatprep.subr.mxu1 %v724_v10 }
 0x1f2   : > { %1145 = vmatpush3.msra.mxu1 %v724_v10 }
 0x1f3   : > { %1146 = vmatprep.subr.mxu1 %v723_v11 }
 0x1f4   : > { %1147 = vmatpush3.msra.mxu1 %v723_v11 }
 0x1f5   : > { %1148 = vmatprep.subr.mxu1 %v722_v13 }
 0x1f6   : > { %1149 = vmatpush3.msra.mxu1 %v722_v13 }
 0x1f7   : > { %1150 = vmatprep.subr.mxu1 %v721_v15 }
 0x1f8   : > { %1151 = vmatpush3.msra.mxu1 %v721_v15 }
 0x1f9   : > { %1152 = vmatprep.subr.mxu1 %v720_v20 }
 0x1fa   : > { %1153 = vmatpush3.msra.mxu1 %v720_v20 }
 0x2a3   : > { %v1102_v35 = vpop.f32.mrf.mxu1 }
 0x2a4   : > { %v564_v36 = vadd.f32 %v1102_v35, %v962_v34 }
 0x2a5   : > { %v558_v38 = vpop.f32.mrf.mxu1 }
 0x2a6   : > { %v1526_v40 = vadd.f32 %v564_v36, %v1458_v57  ;;  %v559_v41 = vadd.f32 %v962_v34, %v558_v38 }
 0x2a8   : > { %vm587_vm12 = vcmp.ge.f32.partialorder %v1526_v40, 0.0  ;;  %v595_v43 = vmul.f32 %v979_v37, %v1526_v40  ;;  %v1534_v44 = vadd.f32 %v559_v41, %v1466_v61 }
 0x2aa   : > { %vm586_vm13 = vcmp.ge.f32.partialorder %v1534_v44, 0.0  ;;  %v594_v46 = vmul.f32 %v979_v37, %v1534_v44  ;;  %v597_v47 = vsel %vm587_vm12, %v1526_v40, %v595_v43 }
 0x2ab   : > { %v601_v48 = vrot.slane %v597_v47, 4 }
 0x2ac   : > { %v596_v49 = vsel %vm586_vm13, %v1534_v44, %v594_v46 }
 0x2ad   : > { %v600_v50 = vrot.slane %v596_v49, 4  ;;  %v607_v51 = vsel %vm464_vm11, %v601_v48, 0.0 }
 0x2ae   : > { %v613_v55 = vrot.slane %v607_v51, 4 }
 0x2af   : > { %v602_v52 = vsel %vm464_vm11, %v600_v50, %v601_v48  ;;  %v606_v53 = vsel %vm464_vm11, 0.0, %v600_v50 }
 0x2b0   : > { %v611_v54 = vrot.slane %v602_v52, 4  ;;  %v610_v56 = vrot.slane %v606_v53, 4 }
 0x2b2   : > { %v614_v57 = vsel %vm464_vm11, %v611_v54, %v613_v55  ;;  %v612_v58 = vsel %vm464_vm11, %v610_v56, %v611_v54 }
 0x2b3   : > { %617 = vrot.lane.b32.xlu1 %v614_v57, %s1262_s17  ;;  %615 = vrot.lane.b32.xlu0 %v612_v58, %s1262_s17 }
 0x2b7   : > { %623 = vrot.lane.b32.xlu1 %v607_v51, %s1263_s18  ;;  %621 = vrot.lane.b32.xlu0 %v602_v52, %s1263_s18 }
 0x325   : > { %v618_v59 = vpop.permute.xlu1 %617  ;;  %v616_v60 = vpop.permute.xlu0 %615 }
 0x326   : > { %v628_v61 = vsel %vm315_vm5, %v602_v52, %v618_v59  ;;  %v627_v62 = vsel %vm315_vm5, %v606_v53, %v616_v60 }
 0x329   : > { %v624_v63 = vpop.permute.xlu1 %623  ;;  %v622_v0 = vpop.permute.xlu0 %621 }
 0x32a   : > { %v630_v1 = vsel %vm318_vm6, %v628_v61, %v624_v63  ;;  %v629_v2 = vsel %vm318_vm6, %v627_v62, %v622_v0 }
 0x32b   : > { %1127 = vmatprep.mubr.msk.f32.mxu0 %vm327_vm7, %v629_v2 }
 0x32c   : > { %1128 = vmatmul.mubr.msk.f32.vlgmr.msra.gmra.mxu0 %vm327_vm7, %v630_v1 }
 0x3ec   : > { %v1129_v14 = vpop.f32.mrf.mxu0 }
 0x3ed   : > { %v715_v16 = vadd.f32 %v1129_v14, %v980_v12 }
 0x3ee   : > { %v709_v17 = vpop.f32.mrf.mxu0 }
 0x3ef   : > { %v719_v18 = vadd.f32 %v715_v16, %v1526_v40  ;;  %v710_v19 = vadd.f32 %v980_v12, %v709_v17 }
 0x3f1   : > { %v736_v21 = vrot.slane %v719_v18, 7  ;;  %v718_v22 = vadd.f32 %v710_v19, %v1534_v44 }
 0x3f3   : > { %v742_v23 = vsel %vm280_vm2, %v736_v21, 0.0  ;;  %v735_v24 = vrot.slane %v718_v22, 7 }
 0x3f4   : > { %v748_v27 = vrot.slane %v742_v23, 1  ;;  %v759_v34 = vrot.slane %v742_v23, 2 }
 0x3f5   : > { %v737_v25 = vsel %vm280_vm2, %v735_v24, %v736_v21  ;;  %v741_v26 = vsel %vm280_vm2, 0.0, %v735_v24 }
 0x3f6   : > { %v746_v28 = vrot.slane %v737_v25, 1  ;;  %v745_v29 = vrot.slane %v741_v26, 1  ;;  %v757_v32 = vrot.slane %v737_v25, 2  ;;  %v756_v33 = vrot.slane %v741_v26, 2 }
 0x3f8   : > { %v749_v30 = vsel %vm291_vm3, %v746_v28, %v748_v27  ;;  %v747_v31 = vsel %vm291_vm3, %v745_v29, %v746_v28  ;;  %v760_v35 = vsel %vm303_vm4, %v757_v32, %v759_v34  ;;  %v758_v36 = vsel %vm303_vm4, %v756_v33, %v757_v32 }
 0x3f9   : > { %752 = vrot.lane.b32.xlu1 %v749_v30, %s1262_s17  ;;  %750 = vrot.lane.b32.xlu0 %v747_v31, %s1262_s17  ;;  %s242_s17 = sand.u32 1, %s1252_s22  }
 0x3fa   : > { %s940_s16 = sshll.u32 %s242_s17, 4  ;;  %s1630_s11 = scalar_lea.sflag [#allocation3], %s242_s17 }
 0x3fb   : > { %s244_s20 = scalar_lea.vmem [#allocation2], %s940_s16 }
 0x3fc   : > { %s874_s26 = sshll.u32 %s244_s20, 4  ;;  %s1621_s26 = int_to_ptr.vmem [resolvable:$true] %s874_s26 }
 0x3fd   : > { %763 = vrot.lane.b32.xlu1 %v760_v35, %s1263_s18  ;;  %761 = vrot.lane.b32.xlu0 %v758_v36, %s1263_s18  ;;  %s1200_s25 = scalar_lea.vmem %s1621_s26, 256  ;;  %p1207_p0 = scmp.lt.s32.totalorder %s1621_s26, %s1205_s13 }
 0x3fe   : > { %p1201_p11 = scmp.ne.s32.totalorder %s1621_s26, %s1200_s25  ;;  %p1208_p1 = scmp.lt.s32.totalorder %s1206_s14, %s1200_s25 }
 0x400   : > { %p1202_p12 = pnand %p1201_p11, %p1340_p5  ;;  %p1209_p2 = por %p1208_p1, %p1207_p0 }
 0x402   : > { %p1203_p13 = pneg %p1202_p12 }
 0x404   : > { %p1210_p3 = pnand %p1209_p2, %p1203_p13 }
 0x46b   : > { %v753_v37 = vpop.permute.xlu1 %752  ;;  %v751_v38 = vpop.permute.xlu0 %750 }
 0x46c   : > { %v768_v39 = vsel %vm315_vm5, %v737_v25, %v753_v37  ;;  %v767_v40 = vsel %vm315_vm5, %v741_v26, %v751_v38 }
 0x46f   : > { %v764_v41 = vpop.permute.xlu1 %763  ;;  %v762_v42 = vpop.permute.xlu0 %761 }
 0x470   : > { %v770_v43 = vsel %vm318_vm6, %v768_v39, %v764_v41  ;;  %v769_v44 = vsel %vm318_vm6, %v767_v40, %v762_v42 }
 0x471   : > { %1154 = vmatprep.mubr.msk.f32.mxu1 %vm327_vm7, %v769_v44 }
 0x472   : > { %1155 = vmatmul.mubr.msk.f32.vlgmr.msra.gmra.mxu1 %vm327_vm7, %v770_v43 }
 0x532   : > { %v1156_v46 = vpop.f32.mrf.mxu1 }
 0x533   : > { %v855_v47 = vadd.f32 %v1156_v46, %v983_v45 }
 0x534   : > { %v849_v48 = vpop.f32.mrf.mxu1 }
 0x535   : > { %859 = vst.msk [vmem:[%s244_s20 + $0x8] sm:$0xff] %vm315_vm5, %v855_v47  ;;  %v850_v49 = vadd.f32 %v983_v45, %v849_v48 }
 0x537   : > { %858 = vst.msk [vmem:[%s244_s20] sm:$0xff] %vm315_vm5, %v850_v49 }
 0x538   : > { %1213 = shalt.err (!%p1210_p3)
}
 0x539   : > { %s1214_s15 = scalar_lea.hbm %s1626_s10, 256  ;;  %s1218_s18 = scalar_lea.hbm %s1676_s6, 512 }
 0x53a   : > { %p1215_p4 = scmp.ne.s32.totalorder %s1626_s10, %s1214_s15  ;;  %p1219_p9 = scmp.lt.s32.totalorder %s1626_s10, %s1676_s6 }
 0x53b   : > { %p1220_p10 = scmp.lt.s32.totalorder %s1218_s18, %s1214_s15 }
 0x53c   : > { %p1216_p7 = pnand %p1215_p4, %p1340_p5 }
 0x53d   : > { %p1221_p11 = por %p1220_p10, %p1219_p9 }
 0x53e   : > { %p1217_p8 = pneg %p1216_p7 }
 0x540   : > { %p1222_p12 = pnand %p1221_p11, %p1217_p8 }
 0x542   : > { %1225 = shalt.err (!%p1222_p12)
}
 0x543   : > { %s1265_s28 = smov 128   ;;  %s1266_s29 = smov 8  }
 0x544   : > { %1157 = dma.vmem_to_hbm [thread:$0]  (%p1340_p5), %s1621_s26, 256, %s1626_s10, %s1630_s11, %s1265_s28, %s1265_s28, %s1266_s29  }
 0x545 PF: > { %p1163_p13 = scmp.ge.s32.totalorder %s1260_s24, 2  ;;  %s889_s9 = sand.u32 1, %s1248_s21  }
 0x546   : > { %s890_s25 = scalar_lea.sflag [#allocation3], %s889_s9 }
 0x547   : > { %p1160_p0 = pnand %p1163_p13, %p1344_p6 }
 0x549   : > { %p1161_p1 = pneg %p1160_p0 }
 0x54b   : > { %1243 = dma.done.wait (%p1161_p1), %s890_s25, 256  }
 0x54c   : > { %1245 = vsyncadd (%p1161_p1), %s890_s25, 4294967040  ;;  %p16_p2 = scmp.ge.s32.totalorder %s1327_s27, 4   ;;  %s1679_s21 = smov %s1252_s22 }
 0x54d   : > { %s1680_s22 = smov %s1256_s23  ;;  %s1681_s23 = smov %s1338_s30 }
 0x54e   : > { %s1682_s24 = smov %s1327_s27  ;;  %18 = sbr.rel (!%p16_p2) target bundleno = 3 (0x3), region = 85 }
 0x553   :  { %895 = vsyncpa [#allocation3], 1 }
 0x554   :  { %897 = vsyncpa [#allocation3 + $0x1], 1 }

</bundles_post_ra>
